<compile_context>
chip_gen: v7x
topology: tpu7x:2x2x1
jax: 0.10.0
libtpu: 0.0.40
codegen_flags: <defaults>
</compile_context>

<pallas_src>
import functools

import jax
import jax.numpy as jnp
from jax.experimental import pallas as pl
from jax.experimental.pallas import tpu as pltpu


_VMEM_LIMIT = 48 * 1024 * 1024    # safe on v5e/v6e (128 MiB) and v7x (64 MiB/TC)
_VMEM_BUDGET = 40 * 1024 * 1024   # budget for resident weights + streamed tiles


def _round_up(x, m):
    return (x + m - 1) // m * m


def _min_sublane(dtype):
    # bf16/fp16 pack two rows per sublane -> min sublane tile is 16.
    return 16 if jnp.dtype(dtype).itemsize == 2 else 8


# --------------------- fused MLP (resident weights) --------------------------

def _fused_mlp_kernel(x_ref, w1_ref, b1_ref, w2_ref, b2_ref, o_ref):
    # x_ref: (tm, K)  w1_ref: (K, H)  b1_ref: (1, H)
    # w2_ref: (H, N)  b2_ref: (1, N)  o_ref: (tm, N)
    h = jnp.dot(x_ref[...], w1_ref[...], preferred_element_type=jnp.float32)
    h = jnp.maximum(h + b1_ref[...], 0.0)                      # bias + ReLU (VPU)
    y = jnp.dot(h.astype(w2_ref.dtype), w2_ref[...],
                preferred_element_type=jnp.float32)
    o_ref[...] = (y + b2_ref[...]).astype(o_ref.dtype)


def _fused_vmem_bytes(tm, K, H, N, itemsize):
    x_blk = 2 * tm * K * itemsize                 # double-buffered x tile
    w = 2 * (K * H + H * N) * itemsize            # weights (conservative: x2)
    b = 2 * (H + N) * 4                           # biases (f32)
    out = 2 * tm * N * itemsize                   # double-buffered output tile
    inter = tm * (H + N) * 4                      # f32 intermediates h / y
    return x_blk + w + b + out + inter


def _pick_tm_fused(M, K, H, N, itemsize, sub):
    if M <= sub:                                  # full-extent block, exempt
        tm = M
        return tm if _fused_vmem_bytes(tm, K, H, N, itemsize) <= _VMEM_BUDGET else None
    cap = _round_up(M, sub)
    for tm in (1024, 512, 256, 128, 64, 32, 16, 8):
        if tm % sub:
            continue
        tm_e = min(tm, cap)
        if _fused_vmem_bytes(tm_e, K, H, N, itemsize) <= _VMEM_BUDGET:
            return tm_e
    return None


def _fused_mlp(x, w1t, b1, w2t, b2, tm):
    M, K = x.shape
    H = w1t.shape[1]
    N = w2t.shape[1]
    return pl.pallas_call(
        _fused_mlp_kernel,
        out_shape=jax.ShapeDtypeStruct((M, N), x.dtype),
        grid_spec=pltpu.PrefetchScalarGridSpec(
            num_scalar_prefetch=0,
            grid=(pl.cdiv(M, tm),),
            in_specs=[
                pl.BlockSpec((tm, K), lambda i: (i, 0)),   # x tile (streamed)
                pl.BlockSpec((K, H), lambda i: (0, 0)),    # W1^T (VMEM-resident)
                pl.BlockSpec((1, H), lambda i: (0, 0)),    # b1
                pl.BlockSpec((H, N), lambda i: (0, 0)),    # W2^T (VMEM-resident)
                pl.BlockSpec((1, N), lambda i: (0, 0)),    # b2
            ],
            out_specs=pl.BlockSpec((tm, N), lambda i: (i, 0)),
        ),
        compiler_params=pltpu.CompilerParams(
            dimension_semantics=("parallel",),             # M tiles shard across TCs
            vmem_limit_bytes=_VMEM_LIMIT,
        ),
    )(x, w1t, b1.reshape(1, H), w2t, b2.reshape(1, N))


# ---------------- fallback: tiled Linear (+ReLU), K-innermost ----------------

def _linear_kernel(x_ref, w_ref, b_ref, o_ref, acc_ref, *, apply_relu):
    # x_ref: (tm, tk)  w_ref: (tk, tn)  b_ref: (1, tn)  o_ref/acc_ref: (tm, tn)
    k = pl.program_id(2)

    @pl.when(k == 0)
    def _():  # fold bias into the accumulator init (no epilogue add)
        acc_ref[...] = jnp.broadcast_to(b_ref[...], acc_ref.shape).astype(jnp.float32)

    acc_ref[...] += jnp.dot(x_ref[...], w_ref[...],
                            preferred_element_type=jnp.float32)

    @pl.when(k == pl.num_programs(2) - 1)
    def _():
        y = acc_ref[...]
        if apply_relu:
            y = jnp.maximum(y, 0.0)
        o_ref[...] = y.astype(o_ref.dtype)


def _tiled_linear(x, wt, b, *, apply_relu, tm=512, tn=512, tk=1024):
    """y = [relu](x @ wt + b); wt already in (K, N) layout."""
    M, K = x.shape
    K2, N = wt.shape
    assert K == K2 and b.shape == (N,)
    sub = _min_sublane(x.dtype)

    tm_e = M if M <= sub else min(tm, _round_up(M, sub))
    tn_e = min(tn, _round_up(N, 128))
    tk_e = min(tk, _round_up(K, 128))

    # Zero-pad ONLY the contraction axis (required for correct accumulation);
    # M relies on Pallas edge blocks, padded N columns are sliced off below.
    Kp = _round_up(K, tk_e)
    Np = _round_up(N, tn_e)
    if Kp != K:
        x = jnp.pad(x, ((0, 0), (0, Kp - K)))
    if (Kp, Np) != (K, N):
        wt = jnp.pad(wt, ((0, Kp - K), (0, Np - N)))
    if Np != N:
        b = jnp.pad(b, (0, Np - N))

    grid = (Np // tn_e, pl.cdiv(M, tm_e), Kp // tk_e)   # K innermost

    out = pl.pallas_call(
        functools.partial(_linear_kernel, apply_relu=apply_relu),
        out_shape=jax.ShapeDtypeStruct((M, Np), x.dtype),
        grid_spec=pltpu.PrefetchScalarGridSpec(
            num_scalar_prefetch=0,
            grid=grid,
            in_specs=[
                pl.BlockSpec((tm_e, tk_e), lambda j, i, k: (i, k)),  # x
                pl.BlockSpec((tk_e, tn_e), lambda j, i, k: (k, j)),  # W^T (K,N)
                pl.BlockSpec((1, tn_e), lambda j, i, k: (0, j)),     # bias
            ],
            out_specs=pl.BlockSpec((tm_e, tn_e), lambda j, i, k: (i, j)),
            scratch_shapes=[pltpu.VMEM((tm_e, tn_e), jnp.float32)],
        ),
        compiler_params=pltpu.CompilerParams(
            dimension_semantics=("parallel", "parallel", "arbitrary"),
            vmem_limit_bytes=_VMEM_LIMIT,
        ),
    )(x, wt, b.reshape(1, Np))

    if Np != N:
        out = out[:, :N]
    return out


# --------------------------------- wrapper -----------------------------------

@functools.partial(jax.jit, static_argnames=("compute_dtype",))
def mlp_forward(x, w1, b1, w2, b2, compute_dtype=None):
    """PyTorch `_MultiLayerPercep` forward.
    w1: (input_dim//2, input_dim), w2: (output_dim, input_dim//2)  (PyTorch layout).
    Optional compute_dtype=jnp.bfloat16 casts x/W at the boundary (f32 accumulate)."""
    if compute_dtype is not None:
        x = x.astype(compute_dtype)
        w1 = w1.astype(compute_dtype)
        w2 = w2.astype(compute_dtype)
    b1 = b1.astype(jnp.float32)
    b2 = b2.astype(jnp.float32)

    lead = x.shape[:-1]
    K = x.shape[-1]
    H = w1.shape[0]
    N = w2.shape[0]
    x2 = x.reshape(-1, K)
    M = x2.shape[0]

    # One-time transpose of the small weights to (K, N) -> MXU-friendly RHS.
    w1t = w1.T
    w2t = w2.T

    itemsize = jnp.dtype(x2.dtype).itemsize
    sub = _min_sublane(x2.dtype)
    tm = _pick_tm_fused(M, K, H, N, itemsize, sub)

    if tm is not None:
        y = _fused_mlp(x2, w1t, b1, w2t, b2, tm)
    else:
        # Weights too large for VMEM residency: two tiled GEMM passes.
        h = _tiled_linear(x2, w1t, b1, apply_relu=True)
        y = _tiled_linear(h, w2t, b2, apply_relu=False)

    return y.reshape(*lead, N)


if __name__ == "__main__":
    # Small deterministic example consistent with the module:
    # batch=8, input_dim=64 -> hidden=32 -> output_dim=32
    batch, input_dim, output_dim = 8, 64, 32
    hidden = input_dim // 2

    key = jax.random.PRNGKey(0)
    kx, kw1, kb1, kw2, kb2 = jax.random.split(key, 5)

    x = jax.random.normal(kx, (batch, input_dim), dtype=jnp.float32)
    w1 = jax.random.normal(kw1, (hidden, input_dim), dtype=jnp.float32) * 0.1
    b1 = jax.random.normal(kb1, (hidden,), dtype=jnp.float32) * 0.1
    w2 = jax.random.normal(kw2, (output_dim, hidden), dtype=jnp.float32) * 0.1
    b2 = jax.random.normal(kb2, (output_dim,), dtype=jnp.float32) * 0.1

    y = mlp_forward(x, w1, b1, w2, b2)
    y = jax.block_until_ready(y)

    # Reference check in plain JAX (same math as the PyTorch module).
    h_ref = jnp.maximum(x @ w1.T + b1, 0.0)
    y_ref = h_ref @ w2.T + b2
    assert y.shape == (batch, output_dim)
    assert jnp.allclose(y, y_ref, atol=1e-4, rtol=1e-4)

    print("KERNEL_OK")
</pallas_src>

<mosaic_0001>
module attributes {stable_mosaic.version = 11 : i64} {
  func.func @_fused_mlp_kernel(%arg0: i32, %arg1: memref<8x64xf32, #tpu.memory_space<vmem>>, %arg2: memref<64x32xf32, #tpu.memory_space<vmem>>, %arg3: memref<1x32xf32, #tpu.memory_space<vmem>>, %arg4: memref<32x32xf32, #tpu.memory_space<vmem>>, %arg5: memref<1x32xf32, #tpu.memory_space<vmem>>, %arg6: memref<8x32xf32, #tpu.memory_space<vmem>>) attributes {dimension_semantics = [#tpu.dimension_semantics<parallel>], iteration_bounds = array<i64: 1>, scalar_prefetch = 0 : i64, scratch_operands = 0 : i64, tpu.core_type = #tpu.core_type<tc>, window_params = [{transform_indices = @transform_0, window_bounds = array<i64: 8, 64>}, {pipeline_mode = #tpu.pipeline_mode<synchronous>, transform_indices = @transform_1, window_bounds = array<i64: 64, 32>}, {pipeline_mode = #tpu.pipeline_mode<synchronous>, transform_indices = @transform_2, window_bounds = array<i64: 1, 32>}, {pipeline_mode = #tpu.pipeline_mode<synchronous>, transform_indices = @transform_3, window_bounds = array<i64: 32, 32>}, {pipeline_mode = #tpu.pipeline_mode<synchronous>, transform_indices = @transform_4, window_bounds = array<i64: 1, 32>}, {transform_indices = @transform_5, window_bounds = array<i64: 8, 32>}]} {
    %c0 = arith.constant 0 : index
    %c0_0 = arith.constant 0 : index
    %0 = vector.load %arg1[%c0, %c0_0] : memref<8x64xf32, #tpu.memory_space<vmem>>, vector<8x64xf32>
    %c0_1 = arith.constant 0 : index
    %c0_2 = arith.constant 0 : index
    %1 = vector.load %arg2[%c0_1, %c0_2] : memref<64x32xf32, #tpu.memory_space<vmem>>, vector<64x32xf32>
    %cst = arith.constant dense<0.000000e+00> : vector<8x32xf32>
    %2 = tpu.matmul %0, %1, %cst {dimension_numbers = #tpu.dot_dimension_numbers<[1], [0], [0], [1], [0, 0, 1, 1], [], []>} : vector<8x64xf32>, vector<64x32xf32>, vector<8x32xf32> -> vector<8x32xf32>
    %c0_3 = arith.constant 0 : index
    %c0_4 = arith.constant 0 : index
    %3 = vector.load %arg3[%c0_3, %c0_4] : memref<1x32xf32, #tpu.memory_space<vmem>>, vector<1x32xf32>
    %4 = vector.broadcast %3 : vector<1x32xf32> to vector<8x32xf32>
    %5 = arith.addf %2, %4 : vector<8x32xf32>
    %cst_5 = arith.constant 0.000000e+00 : f32
    %6 = vector.broadcast %cst_5 : f32 to vector<8x32xf32>
    %7 = arith.maximumf %5, %6 : vector<8x32xf32>
    %c0_6 = arith.constant 0 : index
    %c0_7 = arith.constant 0 : index
    %8 = vector.load %arg4[%c0_6, %c0_7] : memref<32x32xf32, #tpu.memory_space<vmem>>, vector<32x32xf32>
    %cst_8 = arith.constant dense<0.000000e+00> : vector<8x32xf32>
    %9 = tpu.matmul %7, %8, %cst_8 {dimension_numbers = #tpu.dot_dimension_numbers<[1], [0], [0], [1], [0, 0, 1, 1], [], []>} : vector<8x32xf32>, vector<32x32xf32>, vector<8x32xf32> -> vector<8x32xf32>
    %c0_9 = arith.constant 0 : index
    %c0_10 = arith.constant 0 : index
    %10 = vector.load %arg5[%c0_9, %c0_10] : memref<1x32xf32, #tpu.memory_space<vmem>>, vector<1x32xf32>
    %11 = vector.broadcast %10 : vector<1x32xf32> to vector<8x32xf32>
    %12 = arith.addf %9, %11 : vector<8x32xf32>
    %c0_11 = arith.constant 0 : index
    %c0_12 = arith.constant 0 : index
    %13 = vector.load %arg6[%c0_11, %c0_12] : memref<8x32xf32, #tpu.memory_space<vmem>>, vector<8x32xf32>
    tpu.vector_store %arg6[%c0_11, %c0_12], %12 {strides = array<i32>} : memref<8x32xf32, #tpu.memory_space<vmem>>, vector<8x32xf32>,
    return
  }
  func.func @transform_0(%arg0: i32) -> (i32, i32) {
    %c0_i32 = arith.constant 0 : i32
    %c0_i32_0 = arith.constant 0 : i32
    return %arg0, %c0_i32 : i32, i32
  }
  func.func @transform_1(%arg0: i32) -> (i32, i32) {
    %c0_i32 = arith.constant 0 : i32
    %c0_i32_0 = arith.constant 0 : i32
    %c0_i32_1 = arith.constant 0 : i32
    return %c0_i32, %c0_i32_0 : i32, i32
  }
  func.func @transform_2(%arg0: i32) -> (i32, i32) {
    %c0_i32 = arith.constant 0 : i32
    %c0_i32_0 = arith.constant 0 : i32
    %c0_i32_1 = arith.constant 0 : i32
    return %c0_i32, %c0_i32_0 : i32, i32
  }
  func.func @transform_3(%arg0: i32) -> (i32, i32) {
    %c0_i32 = arith.constant 0 : i32
    %c0_i32_0 = arith.constant 0 : i32
    %c0_i32_1 = arith.constant 0 : i32
    return %c0_i32, %c0_i32_0 : i32, i32
  }
  func.func @transform_4(%arg0: i32) -> (i32, i32) {
    %c0_i32 = arith.constant 0 : i32
    %c0_i32_0 = arith.constant 0 : i32
    %c0_i32_1 = arith.constant 0 : i32
    return %c0_i32, %c0_i32_0 : i32, i32
  }
  func.func @transform_5(%arg0: i32) -> (i32, i32) {
    %c0_i32 = arith.constant 0 : i32
    %c0_i32_0 = arith.constant 0 : i32
    return %arg0, %c0_i32 : i32, i32
  }
}

</mosaic_0001>

<bundles_post_ra>
// kernel: mlp_forward.1
= control target key start
LH: loop header
LB: loop body
LE: loop exit
PB: predicated region body
PF: predicated region fallthrough
CT: control target
= control target key end

     0   :  { %v306_v3 = vmov 0.0|0.0   ;;  %vm307_vm0 = vmmov 0   ;;  %v308_v6 = vmov 0.0   ;;  %s397_s0 = inlined_call_operand.vmem [shape: f32[8,64], index: 0, kind: input, shape index: {}]   ;;  %s398_s1 = inlined_call_operand.vmem [shape: f32[64,32], index: 1, kind: input, shape index: {}]   ;;  %s399_s2 = inlined_call_operand.vmem [shape: f32[1,32], index: 2, kind: input, shape index: {}]   ;;  %s400_s3 = inlined_call_operand.vmem [shape: f32[32,32], index: 3, kind: input, shape index: {}]   ;;  %s401_s4 = inlined_call_operand.vmem [shape: f32[1,32], index: 4, kind: input, shape index: {}]   ;;  %s402_s5 = inlined_call_operand.hbm [shape: f32[8,32], index: 5, kind: output, shape index: {}]  }
   0x1   :  { %v22_v0 = vld [vmem:[%s398_s1] sm:$0xff]  ;;  %v23_v1 = vld [vmem:[%s398_s1 + $0x8] sm:$0xff]  ;;  %v24_v2 = vld [vmem:[%s398_s1 + $0x10] sm:$0xff]  ;;  %260 = vmatprep.subr.bf16.mxu0 %v306_v3  ;;  %246 = vmatprep.mubr.msk.f32.mxu0 %vm307_vm0, %v308_v6 }
   0x2   :  { %v261_v4 = vpack.c.bf16 %v23_v1, %v22_v0  ;;  %v25_v5 = vld [vmem:[%s398_s1 + $0x18] sm:$0xff]  ;;  %272 = vmatprep.subr.bf16.mxu1 %v306_v3  ;;  %257 = vmatprep.mubr.msk.f32.mxu1 %vm307_vm0, %v308_v6  ;;  %v112_v8 = vld [vmem:[%s400_s3] sm:$0xff]  ;;  %v113_v9 = vld [vmem:[%s400_s3 + $0x8] sm:$0xff] }
   0x3   :  { %v264_v7 = vpack.c.bf16 %v25_v5, %v24_v2  ;;  %v26_v10 = vld [vmem:[%s398_s1 + $0x20] sm:$0xff]  ;;  %v27_v11 = vld [vmem:[%s398_s1 + $0x28] sm:$0xff]  ;;  %v273_v12 = vpack.c.bf16 %v113_v9, %v112_v8 }
   0x4   :  { %262 = vmatpush3.bf16.msra.mxu0 %v261_v4 }
   0x5   :  { %263 = vmatprep.subr.bf16.mxu0 %v306_v3 }
   0x6   :  { %10 = vsyncpa [#allocation3], 0  ;;  %274 = vmatpush3.bf16.msra.mxu1 %v273_v12  ;;  %v267_v13 = vpack.c.bf16 %v27_v11, %v26_v10  ;;  %v28_v14 = vld [vmem:[%s398_s1 + $0x30] sm:$0xff]  ;;  %v29_v15 = vld [vmem:[%s398_s1 + $0x38] sm:$0xff]  ;;  %vm37_vm1 = vcmask 523264   ;;  %vm123_vm2 = vcmask 261120  }
   0x7   :  { %275 = vmatprep.subr.bf16.mxu1 %v306_v3  ;;  %v270_v16 = vpack.c.bf16 %v29_v15, %v28_v14  ;;  %v21_v17 = vld [vmem:[%s397_s0] sm:$0xff]  ;;  %v114_v18 = vld [vmem:[%s400_s3 + $0x10] sm:$0xff]  ;;  %v115_v19 = vld [vmem:[%s400_s3 + $0x18] sm:$0xff]  ;;  %s309_s21 = smov [#allocation2]  }
   0x8   :  { %265 = vmatpush3.bf16.msra.mxu0 %v264_v7  ;;  %v276_v20 = vpack.c.bf16 %v115_v19, %v114_v18  ;;  %v212_v21 = vld [vmem:[%s399_s2] ss:$0 sm:$0xff]  ;;  %s204_s22 = sshll.u32 %s309_s21, 4  ;;  %s205_s22 = int_to_ptr.vmem [resolvable:$true] %s204_s22 }
   0x9   :  { %266 = vmatprep.subr.bf16.mxu0 %v306_v3  ;;  %v214_v26 = vld [vmem:[%s401_s4] ss:$0 sm:$0xff]  ;;  %s282_s3 = scalar_lea.vmem %s205_s22, 128  ;;  %p287_p1 = scmp.lt.s32.totalorder %s205_s22, %s205_s22 }
   0xa   :  { %277 = vmatpush3.bf16.msra.mxu1 %v276_v20  ;;  %p283_p0 = scmp.ne.s32.totalorder %s205_s22, %s282_s3  ;;  %p288_p2 = scmp.lt.s32.totalorder %s282_s3, %s282_s3 }
   0xc   :  { %268 = vmatpush3.bf16.msra.mxu0 %v267_v13  ;;  %p289_p3 = por %p288_p2, %p287_p1 }
   0xd   :  { %269 = vmatprep.subr.bf16.mxu0 %v306_v3 }
   0xe   :  { %p290_p4 = pnand %p289_p3, %p283_p0 }
  0x10   :  { %271 = vmatpush3.bf16.msra.mxu0 %v270_v16 }
  0x13   :  { %247 = vmatmul.mubr.msk.f32.vlgmr.msra.gmra.mrb[0].mxu0 %vm37_vm1, %v21_v17 }
  0xe6   :  { %v107_v22 = vpop.f32.mrb[0].mxu0 }
  0xe7   :  { %v108_v23 = vadd.f32 %v212_v21, %v107_v22  ;;  %v248_v24 = vpop.f32.mrb[1].mxu0 }
  0xe9   :  { %v111_v25 = vmax.f32 %v108_v23, 0.0 }
  0xeb   :  { %258 = vmatmul.mubr.msk.f32.vlgmr.msra.gmra.mrb[0].mxu1 %vm123_vm2, %v111_v25 }
 0x1be   :  { %v193_v27 = vpop.f32.mrb[0].mxu1 }
 0x1bf   :  { %v194_v28 = vadd.f32 %v214_v26, %v193_v27  ;;  %v259_v29 = vpop.f32.mrb[1].mxu1 }
 0x1c1   :  { %197 = vst.msk [vmem:[#allocation2] sm:$0xff] %vm123_vm2, %v194_v28 }
 0x1c2   :  { %293 = shalt.err (!%p290_p4)
}
 0x1c3   :  { %s294_s24 = scalar_lea.hbm %s402_s5, 128 }
 0x1c4   :  { %p295_p5 = scmp.ne.s32.totalorder %s402_s5, %s294_s24  ;;  %p298_p6 = scmp.lt.u32.totalorder %s294_s24, %s402_s5 }
 0x1c6   :  { %p300_p7 = pnand %p298_p6, %p295_p5 }
 0x1c8   :  { %303 = shalt.err (!%p300_p7)
}
 0x1c9   :  { %207 = dma.vmem_to_hbm [thread:$0]  %s205_s22, 128, %s402_s5, [#allocation3]  }
 0x1ca   :  { %304 = dma.done.wait [#allocation3], 128  }
 0x1cb   :  { %305 = vsyncadd [#allocation3], 4294967168 }
 0x1cc   :  { %211 = vsyncpa [#allocation3], 1 }

</bundles_post_ra>
